<compile_context>
chip_gen: v7x
topology: tpu7x:2x2x1
jax: 0.10.0
libtpu: 0.0.40
codegen_flags: <defaults>
</compile_context>

<pallas_src>
import jax
import jax.numpy as jnp
import numpy as np
from jax.experimental import pallas as pl
from jax.experimental.pallas import tpu as pltpu


def _shuffle_copy_kernel(x_ref, o_ref):
    # Fast path (HW % 128 == 0).
    # x_ref: (bB, cpg_blk, HW)  -- group axis Squeezed away by the BlockSpec.
    # o_ref: (bB, cpg_blk, HW)  -- strided HBM placement (lane offset g*HW)
    #                              handled entirely by the output index_map.
    o_ref[...] = x_ref[...]


def _shuffle_gather_kernel(x_ref, o_ref):
    # Fallback path (HW not a multiple of 128).
    # x_ref: (bB, groups, cpg_blk, HW); o_ref: (bB, cpg_blk, groups, HW).
    # Last two block dims equal the full array dims on both sides, so stores
    # stay unmasked; `groups` is a small static constant -> unrolled copies.
    groups = x_ref.shape[1]
    for g in range(groups):
        o_ref[:, :, g, :] = x_ref[:, g, :, :]


def _phys_vmem_bytes():
    # Trace-time hardware query; conservative default if unavailable.
    try:
        v = getattr(pltpu.get_tpu_info(), "vmem_capacity_bytes", None)
        if v:
            return int(v)
    except Exception:
        pass
    return 64 << 20  # v7x per-TC physical VMEM (smallest of the three gens)


def channel_shuffle(x, groups: int):
    B, C, H, W = x.shape
    assert C % groups == 0, "num_channels must be divisible by groups"
    cpg = C // groups

    # groups == 1 or cpg == 1: the permutation is the identity.
    if groups == 1 or cpg == 1:
        return x

    HW = H * W
    itemsize = jnp.dtype(x.dtype).itemsize
    # Sublane pack factor for the second-to-last block dim
    # (f32 -> 8, bf16 -> 16, int8/fp8 -> 32).
    sub = max(8, 32 // itemsize)

    # Generation-aware tile budget: 128 MiB physical VMEM (v5e/v6e) -> 6 MiB
    # tiles (2 arrays x 2 pipeline buffers ~= 24 MiB, covered by the explicit
    # vmem_limit below); 64 MiB physical (v7x) or unknown -> 3 MiB tiles.
    phys = _phys_vmem_bytes()
    cap = (6 << 20) if phys >= (100 << 20) else (3 << 20)

    total_bytes = B * C * HW * itemsize
    cost = pl.CostEstimate(
        flops=0, transcendentals=0, bytes_accessed=2 * total_bytes
    )

    # Contiguous (free) reshape: lane axis = H*W.
    x_v = x.reshape(B, groups, cpg, HW)

    lane_dense = (HW % 128) == 0

    if lane_dense:
        # ---------------- fast path: lane-dense strided placement ----------
        # Output view (B, cpg, groups*HW): group g lives at lane offset g*HW
        # of every (b, j) row, so the output block (bB, cpg_blk, HW) lands in
        # its strided destination purely via the index_map; body is a copy.
        group_slab = cpg * HW * itemsize  # one group, one batch element
        if group_slab <= cap:
            cpg_blk = cpg
            bB = int(max(1, min(B, cap // group_slab)))
        else:
            # Enforce the cap by splitting cpg in sublane-aligned chunks.
            bB = 1
            if cpg <= sub:
                cpg_blk = cpg
            else:
                cpg_blk = ((cap // (HW * itemsize)) // sub) * sub
                cpg_blk = int(min(max(cpg_blk, sub), cpg))

        n_b = int(pl.cdiv(B, bB))
        n_c = int(pl.cdiv(cpg, cpg_blk))
        # cpg-chunk axis last: consecutive steps read contiguous input slabs.
        grid = (n_b, groups, n_c)

        in_specs = [
            pl.BlockSpec(
                (bB, pl.Squeezed(), cpg_blk, HW),
                lambda b, g, c: (b, g, c, 0),
            )
        ]
        out_spec = pl.BlockSpec((bB, cpg_blk, HW), lambda b, g, c: (b, c, g))
        out_shape = jax.ShapeDtypeStruct((B, cpg, groups * HW), x.dtype)
        kernel = _shuffle_copy_kernel
        tile_bytes = bB * cpg_blk * HW * itemsize
        dims = ("parallel", "parallel", "parallel")
    else:
        # ---------------- fallback: full-width blocks + in-VMEM regroup ----
        # Views: in (B, groups, cpg, HW), out (B, cpg, groups, HW).  Both
        # blocks keep the FULL last two array dims, so no (8,128) violation
        # and no masked partial-lane stores for HW like 196 or 49.
        row_bytes = groups * HW * itemsize  # one cpg row, all groups, 1 batch
        if cpg * row_bytes <= cap:
            cpg_blk = cpg
            bB = int(max(1, min(B, cap // (cpg * row_bytes))))
        else:
            bB = 1
            if cpg <= sub:
                cpg_blk = cpg
            else:
                cpg_blk = ((cap // row_bytes) // sub) * sub
                cpg_blk = int(min(max(cpg_blk, sub), cpg))

        # Keep >=2 grid steps when possible so megacore can shard the copy.
        if B > 1 and int(pl.cdiv(B, bB)) * int(pl.cdiv(cpg, cpg_blk)) < 2:
            bB = int(pl.cdiv(B, 2))

        n_b = int(pl.cdiv(B, bB))
        n_c = int(pl.cdiv(cpg, cpg_blk))
        grid = (n_b, n_c)

        in_specs = [
            pl.BlockSpec((bB, groups, cpg_blk, HW), lambda b, c: (b, 0, c, 0))
        ]
        out_spec = pl.BlockSpec(
            (bB, cpg_blk, groups, HW), lambda b, c: (b, c, 0, 0)
        )
        out_shape = jax.ShapeDtypeStruct((B, cpg, groups, HW), x.dtype)
        kernel = _shuffle_gather_kernel
        tile_bytes = bB * groups * cpg_blk * HW * itemsize
        dims = ("parallel", "parallel")

    # 2 arrays x 2 pipeline buffers + 1 MiB slack; floor at 16 MiB (v5e scoped
    # default), ceiling at ~half the physical VMEM of this generation.
    # (For very long grids with tiny tiles, pipeline_mode=pl.Buffered(3) on
    # the input spec is a further option; not needed at these sizes.)
    vmem_limit = int(
        min(max(4 * tile_bytes + (1 << 20), 16 << 20), max(phys // 2, 16 << 20))
    )

    out_v = pl.pallas_call(
        kernel,
        out_shape=out_shape,
        grid=grid,
        in_specs=in_specs,
        out_specs=out_spec,
        compiler_params=pltpu.CompilerParams(
            dimension_semantics=dims,
            vmem_limit_bytes=vmem_limit,
        ),
        cost_estimate=cost,
    )(x_v)

    # Both output views flatten to channel order c_out = j*groups + g, which
    # matches the PyTorch module; reshape back to NCHW is contiguous (free).
    return out_v.reshape(B, C, H, W)


def channel_shuffle_ref(x, groups: int):
    # Pure-JAX reference mirroring the PyTorch forward exactly.
    B, C, H, W = x.shape
    cpg = C // groups
    y = x.reshape(B, groups, cpg, H, W)
    y = jnp.transpose(y, (0, 2, 1, 3, 4))
    return y.reshape(B, C, H, W)


if __name__ == "__main__":
    key = jax.random.PRNGKey(0)

    # 1) Lane-dense fast path: HW = 16*16 = 256 (multiple of 128).
    x1 = jax.random.normal(key, (2, 4, 16, 16), dtype=jnp.float32)
    out1 = jax.block_until_ready(channel_shuffle(x1, 2))
    ref1 = channel_shuffle_ref(x1, 2)
    assert out1.shape == ref1.shape and out1.dtype == ref1.dtype
    assert jnp.array_equal(np.asarray(out1), np.asarray(ref1)), (
        "fast-path mismatch vs reference channel shuffle"
    )

    # 2) Fallback path: HW = 14*14 = 196 (NOT a multiple of 128), groups = 3.
    x2 = jax.random.normal(jax.random.PRNGKey(0), (2, 6, 14, 14),
                           dtype=jnp.float32)
    out2 = jax.block_until_ready(channel_shuffle(x2, 3))
    ref2 = channel_shuffle_ref(x2, 3)
    assert out2.shape == ref2.shape and out2.dtype == ref2.dtype
    assert jnp.array_equal(np.asarray(out2), np.asarray(ref2)), (
        "fallback-path mismatch vs reference channel shuffle"
    )

    print("KERNEL_OK")
</pallas_src>

<mosaic_0001>
module attributes {stable_mosaic.version = 11 : i64} {
  func.func @_shuffle_copy_kernel(%arg0: i32, %arg1: i32, %arg2: i32, %arg3: memref<2x1x2x256xf32, #tpu.memory_space<vmem>>, %arg4: memref<2x2x256xf32, #tpu.memory_space<vmem>>) attributes {dimension_semantics = [#tpu.dimension_semantics<parallel>, #tpu.dimension_semantics<parallel>, #tpu.dimension_semantics<parallel>], iteration_bounds = array<i64: 1, 2, 1>, scalar_prefetch = 0 : i64, scratch_operands = 0 : i64, tpu.core_type = #tpu.core_type<tc>, window_params = [{transform_indices = @transform_0, window_bounds = array<i64: 2, 1, 2, 256>}, {transform_indices = @transform_1, window_bounds = array<i64: 2, 2, 256>}]} {
    %c0 = arith.constant 0 : index
    %c0_0 = arith.constant 0 : index
    %c0_1 = arith.constant 0 : index
    %c0_2 = arith.constant 0 : index
    %0 = vector.load %arg3[%c0, %c0_0, %c0_1, %c0_2] : memref<2x1x2x256xf32, #tpu.memory_space<vmem>>, vector<2x1x2x256xf32>
    %1 = vector.shape_cast %0 : vector<2x1x2x256xf32> to vector<2x2x256xf32>
    %c0_3 = arith.constant 0 : index
    %c0_4 = arith.constant 0 : index
    %c0_5 = arith.constant 0 : index
    %2 = vector.load %arg4[%c0_3, %c0_4, %c0_5] : memref<2x2x256xf32, #tpu.memory_space<vmem>>, vector<2x2x256xf32>
    tpu.vector_store %arg4[%c0_3, %c0_4, %c0_5], %1 {strides = array<i32>} : memref<2x2x256xf32, #tpu.memory_space<vmem>>, vector<2x2x256xf32>,
    return
  }
  func.func @transform_0(%arg0: i32, %arg1: i32, %arg2: i32) -> (i32, i32, i32, i32) {
    %c0_i32 = arith.constant 0 : i32
    %c0_i32_0 = arith.constant 0 : i32
    return %arg0, %arg1, %arg2, %c0_i32 : i32, i32, i32, i32
  }
  func.func @transform_1(%arg0: i32, %arg1: i32, %arg2: i32) -> (i32, i32, i32) {
    %c0_i32 = arith.constant 0 : i32
    return %arg0, %arg2, %arg1 : i32, i32, i32
  }
}

</mosaic_0001>

<bundles_post_ra>
// kernel: tpu_custom_call.1
= control target key start
LH: loop header
LB: loop body
LE: loop exit
PB: predicated region body
PF: predicated region fallthrough
CT: control target
= control target key end

     0   :  { %6 = vsyncpa [#allocation3], 0  ;;  %s677_s0 = inlined_call_operand.hbm [shape: f32[2,2,2,256], index: 0, kind: input, shape index: {}]   ;;  %s678_s1 = inlined_call_operand.hbm [shape: f32[2,2,512], index: 1, kind: output, shape index: {}]  }
   0x1   :  { %8 = vsyncpa [#allocation3 + $0x1], 0 }
   0x2   :  { %9 = vsyncpa [#allocation4], 0 }
   0x3   :  { %11 = vsyncpa [#allocation4 + $0x1], 0  ;;  %s504_s6 = smov 0   ;;  %s506_s7 = smov 0  }
   0x4   :  { %s508_s8 = smov 0   ;;  %s510_s9 = smov 0  }
   0x5   :  { %s512_s10 = smov 0   ;;  %s514_s11 = smov 0  }
   0x6 LB: > { %s287_s12 = sadd.s32 4294967295, %s484_s11   ;;  %s288_s13 = sadd.s32 4294967294, %s484_s11   ;;  %s484_s11 = sphi %s514_s11, %s17_s11   ;;  %s480_s10 = sphi %s512_s10, %s692_s10   ;;  %s476_s9 = sphi %s510_s9, %s691_s9   ;;  %s472_s8 = sphi %s508_s8, %s690_s8   ;;  %s468_s7 = sphi %s506_s7, %s689_s7   ;;  %s464_s6 = sphi %s504_s6, %s688_s6  }
   0x7   : > { %s32_s14 = sadd.s32 1, %s480_s10  ;;  %s47_s15 = sadd.s32 1, %s472_s8 }
   0x8   : > { %p34_p0 = scmp.ge.s32.totalorder %s32_s14, 2  ;;  %p54_p1 = scmp.ne.s32.totalorder %s472_s8, %s468_s7 }
   0x9   : > { %p55_p2 = scmp.eq.s32.totalorder %s484_s11, 0  ;;  %p60_p3 = scmp.ne.s32.totalorder %s468_s7, %s464_s6 }
   0xa   : > { %s694_s14 = smov (%p34_p0, %s32_s14), 0  ;;  %p61_p5 = scmp.eq.s32.totalorder %s287_s12, 0 }
   0xb   : > { %p545_p4 = por %p55_p2, %p54_p1  ;;  %s41_s17 = ssub.s32 %s480_s10, %s694_s14 }
   0xc   : > { %p88_p6 = scmp.eq.s32.totalorder %s287_s12, 1  ;;  %p45_p7 = scmp.eq.s32.totalorder %s41_s17, 0 }
   0xd   : > { %p551_p8 = por %p61_p5, %p60_p3  ;;  %p94_p10 = scmp.eq.s32.totalorder %s288_s13, 1 }
   0xe   : > { %p555_p9 = por %p88_p6, %p54_p1  ;;  %p316_p13 = scmp.lt.s32.totalorder %s484_s11, 2 }
   0xf   : > { %s560_s20 = scalar_select %p45_p7, %s472_s8, %s47_s15  }
  0x10   : > { %s682_s19 = scalar_select %p555_p9, 1, 0 }
  0x11   : > { %p562_p11 = por %p94_p10, %p60_p3  ;;  %s114_s22 = sand.u32 1, %s472_s8  }
  0x12   : > { %s291_s23 = sshll.u32 %s114_s22, 3  ;;  %s302_s24 = sshll.u32 %s480_s10, 6 }
  0x13   : > { %s683_s21 = scalar_select %p562_p11, 1, 0 }
  0x14   : > { %s573_s27 = scalar_lea.hbm %s677_s0, %s302_s24  ;;  %s118_s28 = scalar_lea.vmem [#allocation2], %s291_s23 }
  0x15   : > { %s130_s29 = sshll.u32 %s118_s28, 4  ;;  %p579_p0 = pnand %p316_p13, %p545_p4  ;;  %s575_s29 = int_to_ptr.vmem [resolvable:$true] %s130_s29 }
  0x16   : > { %s583_s2 = scalar_lea.sflag [#allocation3], %s114_s22  ;;  %s372_s3 = scalar_lea.hbm %s573_s27, 128 }
  0x17   : > { %p373_p1 = scmp.ne.s32.totalorder %s573_s27, %s372_s3  ;;  %p374_p2 = pneg %p579_p0 }
  0x18   : > { %s377_s12 = scalar_lea.hbm %s677_s0, 256  ;;  %p378_p4 = scmp.lt.u32.totalorder %s573_s27, %s677_s0 }
  0x19   : > { %p375_p3 = pnand %p374_p2, %p373_p1  ;;  %p379_p6 = scmp.lt.u32.totalorder %s377_s12, %s372_s3 }
  0x1a   : > { %p381_p10 = scmp.lt.u32.totalorder %s372_s3, %s573_s27 }
  0x1b   : > { %p376_p5 = pneg %p375_p3  ;;  %p380_p7 = por %p379_p6, %p378_p4 }
  0x1d   : > { %p382_p13 = por %p381_p10, %p380_p7 }
  0x1f   : > { %p383_p12 = pnand %p382_p13, %p376_p5 }
  0x21   : > { %386 = shalt.err (!%p383_p12)
}
  0x22   : > { %s387_s16 = scalar_lea.vmem %s575_s29, 128  ;;  %s486_s17 = smov [#allocation2]  }
  0x23   : > { %p388_p1 = scmp.ne.s32.totalorder %s575_s29, %s387_s16  ;;  %s392_s22 = sshll.u32 %s486_s17, 4  ;;  %s393_s22 = int_to_ptr.vmem [resolvable:$false] %s392_s22 }
  0x24   : > { %s394_s23 = scalar_lea.vmem %s393_s22, 256  ;;  %p395_p9 = scmp.lt.s32.totalorder %s575_s29, %s393_s22 }
  0x25   : > { %p390_p3 = pnand %p388_p1, %p374_p2  ;;  %p396_p4 = scmp.lt.s32.totalorder %s394_s23, %s387_s16 }
  0x27   : > { %p391_p11 = pneg %p390_p3  ;;  %p397_p6 = por %p396_p4, %p395_p9 }
  0x29   : > { %p398_p7 = pnand %p397_p6, %p391_p11 }
  0x2b   : > { %401 = shalt.err (!%p398_p7)
}
  0x2c   : > { %s487_s24 = smov 128   ;;  %s488_s25 = smov 64  }
  0x2d   : > { %s489_s26 = smov 4   ;;  %p294_p12 = scmp.ge.s32.totalorder %s484_s11, 1 }
  0x2e   : > { %311 = dma.hbm_to_vmem [thread:$0]  (!%p579_p0), %s573_s27, 128, %s575_s29, %s583_s2, %s487_s24, %s488_s25, %s489_s26  }
  0x2f   : > { %p138_p2 = scmp.lt.s32.totalorder %s484_s11, 3 }
  0x31   : > { %p139_p5 = pnand %p294_p12, %p138_p2 }
  0x32   : > { %s614_s28 = sand.u32 (!%p139_p5), 1, %s468_s7  }
  0x33   : > { %142 = sbr.rel (%p139_p5) target bundleno = 87 (0x57), region = 24  ;;  %s295_s3 = sshll.u32 (!%p139_p5), %s614_s28, 3 }
  0x34   : > { %s145_s4 = scalar_lea.sflag (!%p139_p5), [#allocation3], %s614_s28  ;;  %s148_s5 = scalar_lea.vmem (!%p139_p5), [#allocation2], %s295_s3 }
  0x3a   : > { %455 = dma.done.wait (%p551_p8), %s145_s4, 128  }
  0x3b   : > { %457 = vsyncadd (%p551_p8), %s145_s4, 4294967168  ;;  %s166_s27 = scalar_lea.vmem [#allocation5], %s295_s3  ;;  %s303_s30 = sshll.u32 %s476_s9, 6  ;;  %v170_v0 = vld [vmem:[%s148_s5] sm:$0xff]  }
  0x3c   : > { %s193_s29 = sshll.u32 %s166_s27, 4  ;;  %s628_s13 = scalar_lea.hbm %s678_s1, %s303_s30  ;;  %172 = vst [vmem:[%s166_s27] sm:$0xff] %v170_v0   ;;  %s623_s29 = int_to_ptr.vmem [resolvable:$true] %s193_s29 }
  0x3d   : > { %s175_s18 = scalar_lea.sflag [#allocation4], %s614_s28  ;;  %s402_s15 = scalar_lea.vmem %s623_s29, 128 }
  0x3e   : > { %p403_p8 = scmp.ne.s32.totalorder %s623_s29, %s402_s15  ;;  %p685_p9 = scmp.ne.s32.totalorder %s682_s19, 0 }
  0x3f   : > { %s490_s16 = smov [#allocation5]  }
  0x40   : > { %p404_p11 = pnand %p403_p8, %p685_p9  ;;  %s406_s9 = sshll.u32 %s490_s16, 4  ;;  %s407_s9 = int_to_ptr.vmem [resolvable:$false] %s406_s9 }
  0x41   : > { %s408_s17 = scalar_lea.vmem %s407_s9, 256  ;;  %p409_p10 = scmp.lt.s32.totalorder %s623_s29, %s407_s9 }
  0x42   : > { %p405_p0 = pneg %p404_p11  ;;  %p410_p13 = scmp.lt.s32.totalorder %s408_s17, %s402_s15 }
  0x44   : > { %p411_p1 = por %p410_p13, %p409_p10 }
  0x46   : > { %p412_p3 = pnand %p411_p1, %p405_p0 }
  0x48   : > { %415 = shalt.err (!%p412_p3)
}
  0x49   : > { %s416_s22 = scalar_lea.hbm %s628_s13, 128  ;;  %s420_s25 = scalar_lea.hbm %s678_s1, 256 }
  0x4a   : > { %p417_p4 = scmp.ne.s32.totalorder %s628_s13, %s416_s22  ;;  %p421_p12 = scmp.lt.u32.totalorder %s628_s13, %s678_s1 }
  0x4b   : > { %p422_p2 = scmp.lt.u32.totalorder %s420_s25, %s416_s22  ;;  %p424_p8 = scmp.lt.u32.totalorder %s416_s22, %s628_s13 }
  0x4c   : > { %p418_p6 = pnand %p417_p4, %p685_p9 }
  0x4d   : > { %p423_p5 = por %p422_p2, %p421_p12 }
  0x4e   : > { %p419_p7 = pneg %p418_p6 }
  0x4f   : > { %p425_p11 = por %p424_p8, %p423_p5 }
  0x51   : > { %p426_p0 = pnand %p425_p11, %p419_p7 }
  0x53   : > { %429 = shalt.err (!%p426_p0)
}
  0x54   : > { %s491_s4 = smov 64   ;;  %s492_s5 = smov 128  }
  0x55   : > { %s493_s27 = smov 4  }
  0x56   : > { %306 = dma.vmem_to_hbm [thread:$0]  (%p685_p9), %s623_s29, 128, %s628_s13, %s175_s18, %s491_s4, %s492_s5, %s493_s27  }
  0x57 PF: > { %s208_s30 = sand.u32 1, %s464_s6   ;;  %p686_p10 = scmp.ne.s32.totalorder %s683_s21, 0 }
  0x58   : > { %p687_p13 = scmp.ge.s32.totalorder %s484_s11, 2  ;;  %s209_s2 = scalar_lea.sflag [#allocation4], %s208_s30 }
  0x5a   : > { %p313_p1 = pnand %p687_p13, %p686_p10 }
  0x5c   : > { %459 = dma.done.wait (!%p313_p1), %s209_s2, 128  }
  0x5d   : > { %461 = vsyncadd (!%p313_p1), %s209_s2, 4294967168  ;;  %s17_s11 = sadd.s32 1, %s484_s11   ;;  %s688_s6 = smov %s468_s7 }
  0x5e   : > { %p14_p3 = scmp.ge.s32.totalorder %s17_s11, 4   ;;  %s689_s7 = smov %s472_s8 }
  0x5f   : > { %s690_s8 = smov %s560_s20  ;;  %s691_s9 = smov %s480_s10 }
  0x60   : > { %s692_s10 = smov %s694_s14  ;;  %16 = sbr.rel (!%p14_p3) target bundleno = 6 (0x6), region = 69 }
  0x67   :  { %214 = vsyncpa [#allocation3], 1 }
  0x68   :  { %216 = vsyncpa [#allocation3 + $0x1], 1 }
  0x69   :  { %217 = vsyncpa [#allocation4], 1 }
  0x6a   :  { %219 = vsyncpa [#allocation4 + $0x1], 1 }

</bundles_post_ra>
